<compile_context>
chip_gen: v6e
topology: v6e:2x2x1
jax: 0.10.0
libtpu: 0.0.40
codegen_flags: <defaults>
</compile_context>

<pallas_src>
import functools

import jax
import jax.numpy as jnp
from jax.experimental import pallas as pl
from jax.experimental.pallas import tpu as pltpu


def _sigmoid(z):
    # 0.5*(tanh(z/2)+1): one EUP transcendental, no exp overflow.
    return 0.5 * (jnp.tanh(0.5 * z) + 1.0)


def weight_drop_lstm_kernel(x_ref, w_ih_t_ref, w_hh_t_ref, bias_ref, rand_ref,
                            h0_ref, c0_ref,
                            out_ref, hn_ref, cn_ref,
                            h_scr, c_scr, w_scr,
                            *, dropout_p, time_chunk, batch):
    t_blk = pl.program_id(0)
    h_dim = h0_ref.shape[-1]

    # --- first grid step: WeightDrop._setweights() + recurrent-state init ----
    @pl.when(t_blk == 0)
    def _():
        if dropout_p > 0.0:
            keep = (rand_ref[...] >= jnp.float32(dropout_p)).astype(jnp.float32)
            w_scr[...] = (w_hh_t_ref[...] * keep
                          * jnp.float32(1.0 / (1.0 - dropout_p)))
        else:
            w_scr[...] = w_hh_t_ref[...]
        h_scr[...] = h0_ref[...]
        c_scr[...] = c0_ref[...]

    # --- hoisted input projection for the whole chunk (one big matmul) -------
    pre = (jnp.dot(x_ref[...], w_ih_t_ref[...],
                   preferred_element_type=jnp.float32)
           + bias_ref[...])                                   # (Tc*B, 4H)

    w_hh_t = w_scr[...]                                       # (H, 4H) dropped
    h = h_scr[...]
    c = c_scr[...]

    # --- serial recurrence, fully unrolled (time_chunk small & static) -------
    for t in range(time_chunk):
        gates = (jnp.dot(h, w_hh_t, preferred_element_type=jnp.float32)
                 + pre[t * batch:(t + 1) * batch, :])         # (B, 4H)
        i_g = _sigmoid(gates[:, 0 * h_dim:1 * h_dim])
        f_g = _sigmoid(gates[:, 1 * h_dim:2 * h_dim])
        g_g = jnp.tanh(gates[:, 2 * h_dim:3 * h_dim])
        o_g = _sigmoid(gates[:, 3 * h_dim:4 * h_dim])
        c = f_g * c + i_g * g_g
        h = o_g * jnp.tanh(c)
        out_ref[t * batch:(t + 1) * batch, :] = h.astype(out_ref.dtype)

    # carry state to the next T-chunk
    h_scr[...] = h
    c_scr[...] = c
    # (h_n, c_n) blocks are resident across the grid; last write wins.
    hn_ref[...] = h.astype(hn_ref.dtype)
    cn_ref[...] = c.astype(cn_ref.dtype)


def weight_drop_lstm(x, w_ih, w_hh, b_ih, b_hh, h0, c0, *, dropout_key,
                     dropout_p, training=True, time_chunk=None):
    """WeightDrop(LSTM) forward. x: (T, B, I). Returns (out (T,B,H), (h_n, c_n))."""
    T, B, I = x.shape
    H = h0.shape[-1]
    p = float(dropout_p) if training else 0.0
    if not (0.0 <= p < 1.0):
        raise ValueError("dropout_p must be in [0, 1); p == 1 zeroes all weights.")

    if time_chunk is None:
        time_chunk = min(T, 8)
    assert T % time_chunk == 0, "T must be divisible by time_chunk"
    n_chunks = T // time_chunk

    # Pre-transpose weights in the wrapper (removes in-kernel XLU transposes).
    w_ih_t = jnp.transpose(w_ih).astype(jnp.float32)          # (I, 4H)
    w_hh_t = jnp.transpose(w_hh).astype(jnp.float32)          # (H, 4H)  raw
    bias = (b_ih + b_hh).reshape(1, 4 * H).astype(jnp.float32)
    # Uniforms for the Bernoulli keep-mask, drawn directly in (H, 4H) layout.
    rand = jax.random.uniform(dropout_key, (H, 4 * H), jnp.float32)

    # Flatten time into rows so kernel blocks are 2D and lane-layout friendly.
    x2 = x.reshape(T * B, I).astype(jnp.float32)

    kernel = functools.partial(weight_drop_lstm_kernel, dropout_p=p,
                               time_chunk=time_chunk, batch=B)

    cost = pl.CostEstimate(
        flops=2 * T * B * 4 * H * (I + H),
        transcendentals=5 * T * B * H,
        bytes_accessed=4 * (x.size + w_ih.size + w_hh.size
                            + T * B * H + 4 * B * H),
    )

    out2, h_n, c_n = pl.pallas_call(
        kernel,
        out_shape=(
            jax.ShapeDtypeStruct((T * B, H), jnp.float32),    # h_t sequence (flat)
            jax.ShapeDtypeStruct((B, H), jnp.float32),        # h_n
            jax.ShapeDtypeStruct((B, H), jnp.float32),        # c_n
        ),
        grid_spec=pltpu.PrefetchScalarGridSpec(
            num_scalar_prefetch=0,
            grid=(n_chunks,),
            in_specs=[
                pl.BlockSpec((time_chunk * B, I), lambda t: (t, 0)),  # x chunk
                pl.BlockSpec((I, 4 * H), lambda t: (0, 0)),           # W_ih^T
                pl.BlockSpec((H, 4 * H), lambda t: (0, 0)),           # W_hh^T (raw)
                pl.BlockSpec((1, 4 * H), lambda t: (0, 0)),           # bias
                pl.BlockSpec((H, 4 * H), lambda t: (0, 0)),           # uniforms
                pl.BlockSpec((B, H), lambda t: (0, 0)),               # h0
                pl.BlockSpec((B, H), lambda t: (0, 0)),               # c0
            ],
            out_specs=(
                pl.BlockSpec((time_chunk * B, H), lambda t: (t, 0)),  # out chunk
                pl.BlockSpec((B, H), lambda t: (0, 0)),               # h_n
                pl.BlockSpec((B, H), lambda t: (0, 0)),               # c_n
            ),
            scratch_shapes=[
                pltpu.VMEM((B, H), jnp.float32),       # carried h
                pltpu.VMEM((B, H), jnp.float32),       # carried c
                pltpu.VMEM((H, 4 * H), jnp.float32),   # dropped W_hh^T
            ],
        ),
        compiler_params=pltpu.CompilerParams(
            dimension_semantics=("arbitrary",),   # time recurrence is serial
        ),
        cost_estimate=cost,
    )(x2, w_ih_t, w_hh_t, bias, rand, h0, c0)

    return out2.reshape(T, B, H), (h_n, c_n)


if __name__ == "__main__":
    # WeightDrop(nn.LSTM(input_size=16, hidden_size=32), dropout=0.5)
    # Batch padded to 8 (f32 sublane tile); two T-chunks exercise the grid carry.
    T, B, I, H = 8, 8, 16, 32
    dropout_p = 0.5
    time_chunk = 4

    key = jax.random.PRNGKey(0)
    k0, k1, k2, k3, k4, k_drop = jax.random.split(key, 6)
    bound = 1.0 / (H ** 0.5)   # PyTorch LSTM default init U(-1/sqrt(H), 1/sqrt(H))
    w_ih = jax.random.uniform(k0, (4 * H, I), jnp.float32, -bound, bound)
    w_hh = jax.random.uniform(k1, (4 * H, H), jnp.float32, -bound, bound)  # weight_hh_l0_raw
    b_ih = jax.random.uniform(k2, (4 * H,), jnp.float32, -bound, bound)
    b_hh = jax.random.uniform(k3, (4 * H,), jnp.float32, -bound, bound)
    x = jax.random.normal(k4, (T, B, I), jnp.float32)
    h0 = jnp.zeros((B, H), jnp.float32)
    c0 = jnp.zeros((B, H), jnp.float32)

    out, (h_n, c_n) = weight_drop_lstm(
        x, w_ih, w_hh, b_ih, b_hh, h0, c0,
        dropout_key=k_drop, dropout_p=dropout_p, training=True,
        time_chunk=time_chunk)
    jax.block_until_ready((out, h_n, c_n))

    # ---- pure-JAX reference with the identical dropout mask ----
    rand = jax.random.uniform(k_drop, (H, 4 * H), jnp.float32)
    keep = (rand >= dropout_p).astype(jnp.float32)
    w_hh_t_d = w_hh.T * keep / (1.0 - dropout_p)
    w_ih_t = w_ih.T
    bias = b_ih + b_hh

    def ref_step(carry, x_t):
        h, c = carry
        gates = x_t @ w_ih_t + h @ w_hh_t_d + bias
        i_g = _sigmoid(gates[:, 0 * H:1 * H])
        f_g = _sigmoid(gates[:, 1 * H:2 * H])
        g_g = jnp.tanh(gates[:, 2 * H:3 * H])
        o_g = _sigmoid(gates[:, 3 * H:4 * H])
        c = f_g * c + i_g * g_g
        h = o_g * jnp.tanh(c)
        return (h, c), h

    (h_ref, c_ref), out_seq_ref = jax.lax.scan(ref_step, (h0, c0), x)

    assert out.shape == (T, B, H) and h_n.shape == (B, H) and c_n.shape == (B, H)
    assert bool(jnp.all(jnp.isfinite(out)))
    assert bool(jnp.allclose(out, out_seq_ref, atol=1e-2, rtol=1e-2))
    assert bool(jnp.allclose(h_n, h_ref, atol=1e-2, rtol=1e-2))
    assert bool(jnp.allclose(c_n, c_ref, atol=1e-2, rtol=1e-2))
    print("KERNEL_OK")
</pallas_src>

<mosaic_0001>
module attributes {stable_mosaic.version = 11 : i64} {
  func.func @weight_drop_lstm_kernel(%arg0: i32, %arg1: memref<32x16xf32, #tpu.memory_space<vmem>>, %arg2: memref<16x128xf32, #tpu.memory_space<vmem>>, %arg3: memref<32x128xf32, #tpu.memory_space<vmem>>, %arg4: memref<1x128xf32, #tpu.memory_space<vmem>>, %arg5: memref<32x128xf32, #tpu.memory_space<vmem>>, %arg6: memref<8x32xf32, #tpu.memory_space<vmem>>, %arg7: memref<8x32xf32, #tpu.memory_space<vmem>>, %arg8: memref<32x32xf32, #tpu.memory_space<vmem>>, %arg9: memref<8x32xf32, #tpu.memory_space<vmem>>, %arg10: memref<8x32xf32, #tpu.memory_space<vmem>>, %arg11: memref<8x32xf32, #tpu.memory_space<vmem>>, %arg12: memref<8x32xf32, #tpu.memory_space<vmem>>, %arg13: memref<32x128xf32, #tpu.memory_space<vmem>>) attributes {dimension_semantics = [#tpu.dimension_semantics<arbitrary>], iteration_bounds = array<i64: 2>, scalar_prefetch = 0 : i64, scratch_operands = 3 : i64, tpu.core_type = #tpu.core_type<tc>, window_params = [{transform_indices = @transform_0, window_bounds = array<i64: 32, 16>}, {pipeline_mode = #tpu.pipeline_mode<synchronous>, transform_indices = @transform_1, window_bounds = array<i64: 16, 128>}, {pipeline_mode = #tpu.pipeline_mode<synchronous>, transform_indices = @transform_2, window_bounds = array<i64: 32, 128>}, {pipeline_mode = #tpu.pipeline_mode<synchronous>, transform_indices = @transform_3, window_bounds = array<i64: 1, 128>}, {pipeline_mode = #tpu.pipeline_mode<synchronous>, transform_indices = @transform_4, window_bounds = array<i64: 32, 128>}, {pipeline_mode = #tpu.pipeline_mode<synchronous>, transform_indices = @transform_5, window_bounds = array<i64: 8, 32>}, {pipeline_mode = #tpu.pipeline_mode<synchronous>, transform_indices = @transform_6, window_bounds = array<i64: 8, 32>}, {transform_indices = @transform_7, window_bounds = array<i64: 32, 32>}, {pipeline_mode = #tpu.pipeline_mode<synchronous>, transform_indices = @transform_8, window_bounds = array<i64: 8, 32>}, {pipeline_mode = #tpu.pipeline_mode<synchronous>, transform_indices = @transform_9, window_bounds = array<i64: 8, 32>}]} {
    %c0_i32 = arith.constant 0 : i32
    %0 = arith.cmpi eq, %arg0, %c0_i32 : i32
    %1 = arith.extui %0 : i1 to i32
    %c0_i32_0 = arith.constant 0 : i32
    %2 = arith.cmpi ne, %1, %c0_i32_0 : i32
    scf.if %2 {
      %c0_65 = arith.constant 0 : index
      %c0_66 = arith.constant 0 : index
      %156 = vector.load %arg5[%c0_65, %c0_66] : memref<32x128xf32, #tpu.memory_space<vmem>>, vector<32x128xf32>
      %cst_67 = arith.constant 5.000000e-01 : f32
      %157 = vector.broadcast %cst_67 : f32 to vector<32x128xf32>
      %158 = arith.cmpf oge, %156, %157 : vector<32x128xf32>
      %159 = arith.extui %158 : vector<32x128xi1> to vector<32x128xi32>
      %160 = arith.sitofp %159 : vector<32x128xi32> to vector<32x128xf32>
      %c0_68 = arith.constant 0 : index
      %c0_69 = arith.constant 0 : index
      %161 = vector.load %arg3[%c0_68, %c0_69] : memref<32x128xf32, #tpu.memory_space<vmem>>, vector<32x128xf32>
      %162 = arith.mulf %161, %160 : vector<32x128xf32>
      %cst_70 = arith.constant 2.000000e+00 : f32
      %163 = vector.broadcast %cst_70 : f32 to vector<32x128xf32>
      %164 = arith.mulf %162, %163 : vector<32x128xf32>
      %c0_71 = arith.constant 0 : index
      %c0_72 = arith.constant 0 : index
      %165 = vector.load %arg13[%c0_71, %c0_72] : memref<32x128xf32, #tpu.memory_space<vmem>>, vector<32x128xf32>
      tpu.vector_store %arg13[%c0_71, %c0_72], %164 {strides = array<i32>} : memref<32x128xf32, #tpu.memory_space<vmem>>, vector<32x128xf32>,
      %c0_73 = arith.constant 0 : index
      %c0_74 = arith.constant 0 : index
      %166 = vector.load %arg6[%c0_73, %c0_74] : memref<8x32xf32, #tpu.memory_space<vmem>>, vector<8x32xf32>
      %c0_75 = arith.constant 0 : index
      %c0_76 = arith.constant 0 : index
      %167 = vector.load %arg11[%c0_75, %c0_76] : memref<8x32xf32, #tpu.memory_space<vmem>>, vector<8x32xf32>
      tpu.vector_store %arg11[%c0_75, %c0_76], %166 {strides = array<i32>} : memref<8x32xf32, #tpu.memory_space<vmem>>, vector<8x32xf32>,
      %c0_77 = arith.constant 0 : index
      %c0_78 = arith.constant 0 : index
      %168 = vector.load %arg7[%c0_77, %c0_78] : memref<8x32xf32, #tpu.memory_space<vmem>>, vector<8x32xf32>
      %c0_79 = arith.constant 0 : index
      %c0_80 = arith.constant 0 : index
      %169 = vector.load %arg12[%c0_79, %c0_80] : memref<8x32xf32, #tpu.memory_space<vmem>>, vector<8x32xf32>
      tpu.vector_store %arg12[%c0_79, %c0_80], %168 {strides = array<i32>} : memref<8x32xf32, #tpu.memory_space<vmem>>, vector<8x32xf32>,
    } else {
    }
    %c0 = arith.constant 0 : index
    %c0_1 = arith.constant 0 : index
    %3 = vector.load %arg1[%c0, %c0_1] : memref<32x16xf32, #tpu.memory_space<vmem>>, vector<32x16xf32>
    %c0_2 = arith.constant 0 : index
    %c0_3 = arith.constant 0 : index
    %4 = vector.load %arg2[%c0_2, %c0_3] : memref<16x128xf32, #tpu.memory_space<vmem>>, vector<16x128xf32>
    %cst = arith.constant dense<0.000000e+00> : vector<32x128xf32>
    %5 = tpu.matmul %3, %4, %cst {dimension_numbers = #tpu.dot_dimension_numbers<[1], [0], [0], [1], [0, 0, 1, 1], [], []>} : vector<32x16xf32>, vector<16x128xf32>, vector<32x128xf32> -> vector<32x128xf32>
    %c0_4 = arith.constant 0 : index
    %c0_5 = arith.constant 0 : index
    %6 = vector.load %arg4[%c0_4, %c0_5] : memref<1x128xf32, #tpu.memory_space<vmem>>, vector<1x128xf32>
    %7 = vector.broadcast %6 : vector<1x128xf32> to vector<32x128xf32>
    %8 = arith.addf %5, %7 : vector<32x128xf32>
    %c0_6 = arith.constant 0 : index
    %c0_7 = arith.constant 0 : index
    %9 = vector.load %arg13[%c0_6, %c0_7] : memref<32x128xf32, #tpu.memory_space<vmem>>, vector<32x128xf32>
    %c0_8 = arith.constant 0 : index
    %c0_9 = arith.constant 0 : index
    %10 = vector.load %arg11[%c0_8, %c0_9] : memref<8x32xf32, #tpu.memory_space<vmem>>, vector<8x32xf32>
    %c0_10 = arith.constant 0 : index
    %c0_11 = arith.constant 0 : index
    %11 = vector.load %arg12[%c0_10, %c0_11] : memref<8x32xf32, #tpu.memory_space<vmem>>, vector<8x32xf32>
    %cst_12 = arith.constant dense<0.000000e+00> : vector<8x128xf32>
    %12 = tpu.matmul %10, %9, %cst_12 {dimension_numbers = #tpu.dot_dimension_numbers<[1], [0], [0], [1], [0, 0, 1, 1], [], []>} : vector<8x32xf32>, vector<32x128xf32>, vector<8x128xf32> -> vector<8x128xf32>
    %13 = vector.extract_strided_slice %8 {offsets = [0, 0], sizes = [8, 128], strides = [1, 1]} : vector<32x128xf32> to vector<8x128xf32>
    %14 = arith.addf %12, %13 : vector<8x128xf32>
    %15 = vector.extract_strided_slice %14 {offsets = [0, 0], sizes = [8, 32], strides = [1, 1]} : vector<8x128xf32> to vector<8x32xf32>
    %cst_13 = arith.constant 5.000000e-01 : f32
    %16 = vector.broadcast %cst_13 : f32 to vector<8x32xf32>
    %17 = arith.mulf %16, %15 : vector<8x32xf32>
    %18 = math.tanh %17 : vector<8x32xf32>
    %cst_14 = arith.constant 1.000000e+00 : f32
    %19 = vector.broadcast %cst_14 : f32 to vector<8x32xf32>
    %20 = arith.addf %18, %19 : vector<8x32xf32>
    %cst_15 = arith.constant 5.000000e-01 : f32
    %21 = vector.broadcast %cst_15 : f32 to vector<8x32xf32>
    %22 = arith.mulf %21, %20 : vector<8x32xf32>
    %23 = vector.extract_strided_slice %14 {offsets = [0, 32], sizes = [8, 32], strides = [1, 1]} : vector<8x128xf32> to vector<8x32xf32>
    %cst_16 = arith.constant 5.000000e-01 : f32
    %24 = vector.broadcast %cst_16 : f32 to vector<8x32xf32>
    %25 = arith.mulf %24, %23 : vector<8x32xf32>
    %26 = math.tanh %25 : vector<8x32xf32>
    %cst_17 = arith.constant 1.000000e+00 : f32
    %27 = vector.broadcast %cst_17 : f32 to vector<8x32xf32>
    %28 = arith.addf %26, %27 : vector<8x32xf32>
    %cst_18 = arith.constant 5.000000e-01 : f32
    %29 = vector.broadcast %cst_18 : f32 to vector<8x32xf32>
    %30 = arith.mulf %29, %28 : vector<8x32xf32>
    %31 = vector.extract_strided_slice %14 {offsets = [0, 64], sizes = [8, 32], strides = [1, 1]} : vector<8x128xf32> to vector<8x32xf32>
    %32 = math.tanh %31 : vector<8x32xf32>
    %33 = vector.extract_strided_slice %14 {offsets = [0, 96], sizes = [8, 32], strides = [1, 1]} : vector<8x128xf32> to vector<8x32xf32>
    %cst_19 = arith.constant 5.000000e-01 : f32
    %34 = vector.broadcast %cst_19 : f32 to vector<8x32xf32>
    %35 = arith.mulf %34, %33 : vector<8x32xf32>
    %36 = math.tanh %35 : vector<8x32xf32>
    %cst_20 = arith.constant 1.000000e+00 : f32
    %37 = vector.broadcast %cst_20 : f32 to vector<8x32xf32>
    %38 = arith.addf %36, %37 : vector<8x32xf32>
    %cst_21 = arith.constant 5.000000e-01 : f32
    %39 = vector.broadcast %cst_21 : f32 to vector<8x32xf32>
    %40 = arith.mulf %39, %38 : vector<8x32xf32>
    %41 = arith.mulf %30, %11 : vector<8x32xf32>
    %42 = arith.mulf %22, %32 : vector<8x32xf32>
    %43 = arith.addf %41, %42 : vector<8x32xf32>
    %44 = math.tanh %43 : vector<8x32xf32>
    %45 = arith.mulf %40, %44 : vector<8x32xf32>
    %c0_22 = arith.constant 0 : index
    %c0_23 = arith.constant 0 : index
    %46 = vector.load %arg8[%c0_22, %c0_23] : memref<32x32xf32, #tpu.memory_space<vmem>>, vector<8x32xf32>
    tpu.vector_store %arg8[%c0_22, %c0_23], %45 {strides = array<i32>} : memref<32x32xf32, #tpu.memory_space<vmem>>, vector<8x32xf32>,
    %cst_24 = arith.constant dense<0.000000e+00> : vector<8x128xf32>
    %47 = tpu.matmul %45, %9, %cst_24 {dimension_numbers = #tpu.dot_dimension_numbers<[1], [0], [0], [1], [0, 0, 1, 1], [], []>} : vector<8x32xf32>, vector<32x128xf32>, vector<8x128xf32> -> vector<8x128xf32>
    %48 = vector.extract_strided_slice %8 {offsets = [8, 0], sizes = [8, 128], strides = [1, 1]} : vector<32x128xf32> to vector<8x128xf32>
    %49 = arith.addf %47, %48 : vector<8x128xf32>
    %50 = vector.extract_strided_slice %49 {offsets = [0, 0], sizes = [8, 32], strides = [1, 1]} : vector<8x128xf32> to vector<8x32xf32>
    %cst_25 = arith.constant 5.000000e-01 : f32
    %51 = vector.broadcast %cst_25 : f32 to vector<8x32xf32>
    %52 = arith.mulf %51, %50 : vector<8x32xf32>
    %53 = math.tanh %52 : vector<8x32xf32>
    %cst_26 = arith.constant 1.000000e+00 : f32
    %54 = vector.broadcast %cst_26 : f32 to vector<8x32xf32>
    %55 = arith.addf %53, %54 : vector<8x32xf32>
    %cst_27 = arith.constant 5.000000e-01 : f32
    %56 = vector.broadcast %cst_27 : f32 to vector<8x32xf32>
    %57 = arith.mulf %56, %55 : vector<8x32xf32>
    %58 = vector.extract_strided_slice %49 {offsets = [0, 32], sizes = [8, 32], strides = [1, 1]} : vector<8x128xf32> to vector<8x32xf32>
    %cst_28 = arith.constant 5.000000e-01 : f32
    %59 = vector.broadcast %cst_28 : f32 to vector<8x32xf32>
    %60 = arith.mulf %59, %58 : vector<8x32xf32>
    %61 = math.tanh %60 : vector<8x32xf32>
    %cst_29 = arith.constant 1.000000e+00 : f32
    %62 = vector.broadcast %cst_29 : f32 to vector<8x32xf32>
    %63 = arith.addf %61, %62 : vector<8x32xf32>
    %cst_30 = arith.constant 5.000000e-01 : f32
    %64 = vector.broadcast %cst_30 : f32 to vector<8x32xf32>
    %65 = arith.mulf %64, %63 : vector<8x32xf32>
    %66 = vector.extract_strided_slice %49 {offsets = [0, 64], sizes = [8, 32], strides = [1, 1]} : vector<8x128xf32> to vector<8x32xf32>
    %67 = math.tanh %66 : vector<8x32xf32>
    %68 = vector.extract_strided_slice %49 {offsets = [0, 96], sizes = [8, 32], strides = [1, 1]} : vector<8x128xf32> to vector<8x32xf32>
    %cst_31 = arith.constant 5.000000e-01 : f32
    %69 = vector.broadcast %cst_31 : f32 to vector<8x32xf32>
    %70 = arith.mulf %69, %68 : vector<8x32xf32>
    %71 = math.tanh %70 : vector<8x32xf32>
    %cst_32 = arith.constant 1.000000e+00 : f32
    %72 = vector.broadcast %cst_32 : f32 to vector<8x32xf32>
    %73 = arith.addf %71, %72 : vector<8x32xf32>
    %cst_33 = arith.constant 5.000000e-01 : f32
    %74 = vector.broadcast %cst_33 : f32 to vector<8x32xf32>
    %75 = arith.mulf %74, %73 : vector<8x32xf32>
    %76 = arith.mulf %65, %43 : vector<8x32xf32>
    %77 = arith.mulf %57, %67 : vector<8x32xf32>
    %78 = arith.addf %76, %77 : vector<8x32xf32>
    %79 = math.tanh %78 : vector<8x32xf32>
    %80 = arith.mulf %75, %79 : vector<8x32xf32>
    %c8 = arith.constant 8 : index
    %c0_34 = arith.constant 0 : index
    %81 = vector.load %arg8[%c8, %c0_34] : memref<32x32xf32, #tpu.memory_space<vmem>>, vector<8x32xf32>
    tpu.vector_store %arg8[%c8, %c0_34], %80 {strides = array<i32>} : memref<32x32xf32, #tpu.memory_space<vmem>>, vector<8x32xf32>,
    %cst_35 = arith.constant dense<0.000000e+00> : vector<8x128xf32>
    %82 = tpu.matmul %80, %9, %cst_35 {dimension_numbers = #tpu.dot_dimension_numbers<[1], [0], [0], [1], [0, 0, 1, 1], [], []>} : vector<8x32xf32>, vector<32x128xf32>, vector<8x128xf32> -> vector<8x128xf32>
    %83 = vector.extract_strided_slice %8 {offsets = [16, 0], sizes = [8, 128], strides = [1, 1]} : vector<32x128xf32> to vector<8x128xf32>
    %84 = arith.addf %82, %83 : vector<8x128xf32>
    %85 = vector.extract_strided_slice %84 {offsets = [0, 0], sizes = [8, 32], strides = [1, 1]} : vector<8x128xf32> to vector<8x32xf32>
    %cst_36 = arith.constant 5.000000e-01 : f32
    %86 = vector.broadcast %cst_36 : f32 to vector<8x32xf32>
    %87 = arith.mulf %86, %85 : vector<8x32xf32>
    %88 = math.tanh %87 : vector<8x32xf32>
    %cst_37 = arith.constant 1.000000e+00 : f32
    %89 = vector.broadcast %cst_37 : f32 to vector<8x32xf32>
    %90 = arith.addf %88, %89 : vector<8x32xf32>
    %cst_38 = arith.constant 5.000000e-01 : f32
    %91 = vector.broadcast %cst_38 : f32 to vector<8x32xf32>
    %92 = arith.mulf %91, %90 : vector<8x32xf32>
    %93 = vector.extract_strided_slice %84 {offsets = [0, 32], sizes = [8, 32], strides = [1, 1]} : vector<8x128xf32> to vector<8x32xf32>
    %cst_39 = arith.constant 5.000000e-01 : f32
    %94 = vector.broadcast %cst_39 : f32 to vector<8x32xf32>
    %95 = arith.mulf %94, %93 : vector<8x32xf32>
    %96 = math.tanh %95 : vector<8x32xf32>
    %cst_40 = arith.constant 1.000000e+00 : f32
    %97 = vector.broadcast %cst_40 : f32 to vector<8x32xf32>
    %98 = arith.addf %96, %97 : vector<8x32xf32>
    %cst_41 = arith.constant 5.000000e-01 : f32
    %99 = vector.broadcast %cst_41 : f32 to vector<8x32xf32>
    %100 = arith.mulf %99, %98 : vector<8x32xf32>
    %101 = vector.extract_strided_slice %84 {offsets = [0, 64], sizes = [8, 32], strides = [1, 1]} : vector<8x128xf32> to vector<8x32xf32>
    %102 = math.tanh %101 : vector<8x32xf32>
    %103 = vector.extract_strided_slice %84 {offsets = [0, 96], sizes = [8, 32], strides = [1, 1]} : vector<8x128xf32> to vector<8x32xf32>
    %cst_42 = arith.constant 5.000000e-01 : f32
    %104 = vector.broadcast %cst_42 : f32 to vector<8x32xf32>
    %105 = arith.mulf %104, %103 : vector<8x32xf32>
    %106 = math.tanh %105 : vector<8x32xf32>
    %cst_43 = arith.constant 1.000000e+00 : f32
    %107 = vector.broadcast %cst_43 : f32 to vector<8x32xf32>
    %108 = arith.addf %106, %107 : vector<8x32xf32>
    %cst_44 = arith.constant 5.000000e-01 : f32
    %109 = vector.broadcast %cst_44 : f32 to vector<8x32xf32>
    %110 = arith.mulf %109, %108 : vector<8x32xf32>
    %111 = arith.mulf %100, %78 : vector<8x32xf32>
    %112 = arith.mulf %92, %102 : vector<8x32xf32>
    %113 = arith.addf %111, %112 : vector<8x32xf32>
    %114 = math.tanh %113 : vector<8x32xf32>
    %115 = arith.mulf %110, %114 : vector<8x32xf32>
    %c16 = arith.constant 16 : index
    %c0_45 = arith.constant 0 : index
    %116 = vector.load %arg8[%c16, %c0_45] : memref<32x32xf32, #tpu.memory_space<vmem>>, vector<8x32xf32>
    tpu.vector_store %arg8[%c16, %c0_45], %115 {strides = array<i32>} : memref<32x32xf32, #tpu.memory_space<vmem>>, vector<8x32xf32>,
    %cst_46 = arith.constant dense<0.000000e+00> : vector<8x128xf32>
    %117 = tpu.matmul %115, %9, %cst_46 {dimension_numbers = #tpu.dot_dimension_numbers<[1], [0], [0], [1], [0, 0, 1, 1], [], []>} : vector<8x32xf32>, vector<32x128xf32>, vector<8x128xf32> -> vector<8x128xf32>
    %118 = vector.extract_strided_slice %8 {offsets = [24, 0], sizes = [8, 128], strides = [1, 1]} : vector<32x128xf32> to vector<8x128xf32>
    %119 = arith.addf %117, %118 : vector<8x128xf32>
    %120 = vector.extract_strided_slice %119 {offsets = [0, 0], sizes = [8, 32], strides = [1, 1]} : vector<8x128xf32> to vector<8x32xf32>
    %cst_47 = arith.constant 5.000000e-01 : f32
    %121 = vector.broadcast %cst_47 : f32 to vector<8x32xf32>
    %122 = arith.mulf %121, %120 : vector<8x32xf32>
    %123 = math.tanh %122 : vector<8x32xf32>
    %cst_48 = arith.constant 1.000000e+00 : f32
    %124 = vector.broadcast %cst_48 : f32 to vector<8x32xf32>
    %125 = arith.addf %123, %124 : vector<8x32xf32>
    %cst_49 = arith.constant 5.000000e-01 : f32
    %126 = vector.broadcast %cst_49 : f32 to vector<8x32xf32>
    %127 = arith.mulf %126, %125 : vector<8x32xf32>
    %128 = vector.extract_strided_slice %119 {offsets = [0, 32], sizes = [8, 32], strides = [1, 1]} : vector<8x128xf32> to vector<8x32xf32>
    %cst_50 = arith.constant 5.000000e-01 : f32
    %129 = vector.broadcast %cst_50 : f32 to vector<8x32xf32>
    %130 = arith.mulf %129, %128 : vector<8x32xf32>
    %131 = math.tanh %130 : vector<8x32xf32>
    %cst_51 = arith.constant 1.000000e+00 : f32
    %132 = vector.broadcast %cst_51 : f32 to vector<8x32xf32>
    %133 = arith.addf %131, %132 : vector<8x32xf32>
    %cst_52 = arith.constant 5.000000e-01 : f32
    %134 = vector.broadcast %cst_52 : f32 to vector<8x32xf32>
    %135 = arith.mulf %134, %133 : vector<8x32xf32>
    %136 = vector.extract_strided_slice %119 {offsets = [0, 64], sizes = [8, 32], strides = [1, 1]} : vector<8x128xf32> to vector<8x32xf32>
    %137 = math.tanh %136 : vector<8x32xf32>
    %138 = vector.extract_strided_slice %119 {offsets = [0, 96], sizes = [8, 32], strides = [1, 1]} : vector<8x128xf32> to vector<8x32xf32>
    %cst_53 = arith.constant 5.000000e-01 : f32
    %139 = vector.broadcast %cst_53 : f32 to vector<8x32xf32>
    %140 = arith.mulf %139, %138 : vector<8x32xf32>
    %141 = math.tanh %140 : vector<8x32xf32>
    %cst_54 = arith.constant 1.000000e+00 : f32
    %142 = vector.broadcast %cst_54 : f32 to vector<8x32xf32>
    %143 = arith.addf %141, %142 : vector<8x32xf32>
    %cst_55 = arith.constant 5.000000e-01 : f32
    %144 = vector.broadcast %cst_55 : f32 to vector<8x32xf32>
    %145 = arith.mulf %144, %143 : vector<8x32xf32>
    %146 = arith.mulf %135, %113 : vector<8x32xf32>
    %147 = arith.mulf %127, %137 : vector<8x32xf32>
    %148 = arith.addf %146, %147 : vector<8x32xf32>
    %149 = math.tanh %148 : vector<8x32xf32>
    %150 = arith.mulf %145, %149 : vector<8x32xf32>
    %c24 = arith.constant 24 : index
    %c0_56 = arith.constant 0 : index
    %151 = vector.load %arg8[%c24, %c0_56] : memref<32x32xf32, #tpu.memory_space<vmem>>, vector<8x32xf32>
    tpu.vector_store %arg8[%c24, %c0_56], %150 {strides = array<i32>} : memref<32x32xf32, #tpu.memory_space<vmem>>, vector<8x32xf32>,
    %c0_57 = arith.constant 0 : index
    %c0_58 = arith.constant 0 : index
    %152 = vector.load %arg11[%c0_57, %c0_58] : memref<8x32xf32, #tpu.memory_space<vmem>>, vector<8x32xf32>
    tpu.vector_store %arg11[%c0_57, %c0_58], %150 {strides = array<i32>} : memref<8x32xf32, #tpu.memory_space<vmem>>, vector<8x32xf32>,
    %c0_59 = arith.constant 0 : index
    %c0_60 = arith.constant 0 : index
    %153 = vector.load %arg12[%c0_59, %c0_60] : memref<8x32xf32, #tpu.memory_space<vmem>>, vector<8x32xf32>
    tpu.vector_store %arg12[%c0_59, %c0_60], %148 {strides = array<i32>} : memref<8x32xf32, #tpu.memory_space<vmem>>, vector<8x32xf32>,
    %c0_61 = arith.constant 0 : index
    %c0_62 = arith.constant 0 : index
    %154 = vector.load %arg9[%c0_61, %c0_62] : memref<8x32xf32, #tpu.memory_space<vmem>>, vector<8x32xf32>
    tpu.vector_store %arg9[%c0_61, %c0_62], %150 {strides = array<i32>} : memref<8x32xf32, #tpu.memory_space<vmem>>, vector<8x32xf32>,
    %c0_63 = arith.constant 0 : index
    %c0_64 = arith.constant 0 : index
    %155 = vector.load %arg10[%c0_63, %c0_64] : memref<8x32xf32, #tpu.memory_space<vmem>>, vector<8x32xf32>
    tpu.vector_store %arg10[%c0_63, %c0_64], %148 {strides = array<i32>} : memref<8x32xf32, #tpu.memory_space<vmem>>, vector<8x32xf32>,
    return
  }
  func.func @transform_0(%arg0: i32) -> (i32, i32) {
    %c0_i32 = arith.constant 0 : i32
    %c0_i32_0 = arith.constant 0 : i32
    return %arg0, %c0_i32 : i32, i32
  }
  func.func @transform_1(%arg0: i32) -> (i32, i32) {
    %c0_i32 = arith.constant 0 : i32
    %c0_i32_0 = arith.constant 0 : i32
    %c0_i32_1 = arith.constant 0 : i32
    return %c0_i32, %c0_i32_0 : i32, i32
  }
  func.func @transform_2(%arg0: i32) -> (i32, i32) {
    %c0_i32 = arith.constant 0 : i32
    %c0_i32_0 = arith.constant 0 : i32
    %c0_i32_1 = arith.constant 0 : i32
    return %c0_i32, %c0_i32_0 : i32, i32
  }
  func.func @transform_3(%arg0: i32) -> (i32, i32) {
    %c0_i32 = arith.constant 0 : i32
    %c0_i32_0 = arith.constant 0 : i32
    %c0_i32_1 = arith.constant 0 : i32
    return %c0_i32, %c0_i32_0 : i32, i32
  }
  func.func @transform_4(%arg0: i32) -> (i32, i32) {
    %c0_i32 = arith.constant 0 : i32
    %c0_i32_0 = arith.constant 0 : i32
    %c0_i32_1 = arith.constant 0 : i32
    return %c0_i32, %c0_i32_0 : i32, i32
  }
  func.func @transform_5(%arg0: i32) -> (i32, i32) {
    %c0_i32 = arith.constant 0 : i32
    %c0_i32_0 = arith.constant 0 : i32
    %c0_i32_1 = arith.constant 0 : i32
    return %c0_i32, %c0_i32_0 : i32, i32
  }
  func.func @transform_6(%arg0: i32) -> (i32, i32) {
    %c0_i32 = arith.constant 0 : i32
    %c0_i32_0 = arith.constant 0 : i32
    %c0_i32_1 = arith.constant 0 : i32
    return %c0_i32, %c0_i32_0 : i32, i32
  }
  func.func @transform_7(%arg0: i32) -> (i32, i32) {
    %c0_i32 = arith.constant 0 : i32
    %c0_i32_0 = arith.constant 0 : i32
    return %arg0, %c0_i32 : i32, i32
  }
  func.func @transform_8(%arg0: i32) -> (i32, i32) {
    %c0_i32 = arith.constant 0 : i32
    %c0_i32_0 = arith.constant 0 : i32
    %c0_i32_1 = arith.constant 0 : i32
    return %c0_i32, %c0_i32_0 : i32, i32
  }
  func.func @transform_9(%arg0: i32) -> (i32, i32) {
    %c0_i32 = arith.constant 0 : i32
    %c0_i32_0 = arith.constant 0 : i32
    %c0_i32_1 = arith.constant 0 : i32
    return %c0_i32, %c0_i32_0 : i32, i32
  }
}

</mosaic_0001>

<bundles_post_ra>
// kernel: tpu_custom_call.1
= control target key start
LH: loop header
LB: loop body
LE: loop exit
PB: predicated region body
PF: predicated region fallthrough
CT: control target
= control target key end

     0   :  { %15 = vsyncpa [#allocation6], 0  ;;  %s1556_s0 = inlined_call_operand.vmem [shape: f32[64,16], index: 0, kind: input, shape index: {}]   ;;  %s1557_s1 = inlined_call_operand.vmem [shape: f32[16,128], index: 1, kind: input, shape index: {}]   ;;  %s1558_s2 = inlined_call_operand.vmem [shape: f32[32,128], index: 2, kind: input, shape index: {}]   ;;  %s1559_s3 = inlined_call_operand.vmem [shape: f32[1,128], index: 3, kind: input, shape index: {}]   ;;  %s1560_s4 = inlined_call_operand.vmem [shape: f32[32,128], index: 4, kind: input, shape index: {}]   ;;  %s1561_s5 = inlined_call_operand.vmem [shape: f32[8,32], index: 5, kind: input, shape index: {}]   ;;  %s1562_s6 = inlined_call_operand.hbm [shape: f32[8,32], index: 6, kind: input, shape index: {}]   ;;  %s1563_s7 = inlined_call_operand.vmem [shape: f32[64,32], index: 7, kind: output, shape index: {0}]   ;;  %s1564_s8 = inlined_call_operand.hbm [shape: f32[8,32], index: 8, kind: output, shape index: {1}]   ;;  %s1565_s9 = inlined_call_operand.hbm [shape: f32[8,32], index: 9, kind: output, shape index: {2}]  }
   0x1   :  { %16 = vsyncpa [#allocation7], 0 }
   0x2   :  { %17 = vsyncpa [#allocation10], 0  ;;  %s1355_s30 = smov 0  }
   0x3 LB: > { %s1361_s10 = sadd.s32 4294967295, %s1294_s30   ;;  %p1030_p0 = scmp.ge.s32.totalorder %s1294_s30, 1  ;;  %s1294_s30 = sphi %s1355_s30, %s23_s30  }
   0x4   : > { %p248_p1 = scmp.lt.s32.totalorder %s1294_s30, 3  ;;  %p1031_p2 = scmp.ne.s32.totalorder %s1361_s10, 0 }
   0x5   : > { %p1155_p4 = scmp.eq.s32.totalorder %s1361_s10, 0  ;;  %s1296_s12 = smov [#allocation5]  }
   0x6   : > { %p1366_p3 = pnand %p1030_p0, %p248_p1  ;;  %s276_s13 = sshll.u32 %s1296_s12, 4  ;;  %s277_s13 = int_to_ptr.vmem [resolvable:$true] %s276_s13 }
   0x7   : > { %s1213_s14 = scalar_lea.vmem %s277_s13, 128  ;;  %p1221_p11 = scmp.lt.s32.totalorder %s277_s13, %s277_s13 }
   0x8   : > { %p1151_p5 = pneg %p1366_p3  ;;  %p1214_p8 = scmp.ne.s32.totalorder %s277_s13, %s1213_s14 }
   0x9   : > { %p1222_p12 = scmp.lt.s32.totalorder %s1213_s14, %s1213_s14 }
   0xa   : > { %p1152_p6 = pnand %p1155_p4, %p1151_p5 }
   0xb   : > { %p1223_p13 = por %p1222_p12, %p1221_p11 }
   0xc   : > { %p1204_p7 = pneg %p1152_p6 }
   0xe   : > { %p1216_p9 = pnand %p1214_p8, %p1204_p7 }
  0x10   : > { %p1217_p10 = pneg %p1216_p9 }
  0x12   : > { %p1224_p0 = pnand %p1223_p13, %p1217_p10 }
  0x14   : > { %1227 = shalt.err (!%p1224_p0)
}
  0x15   : > { %1154 = dma.hbm_to_vmem [thread:$0]  (!%p1152_p6), %s1562_s6, 128, %s277_s13, [#allocation6]  }
  0x16   : > { %298 = sbr.rel (%p1366_p3) target bundleno = 2822 (0xb06), region = 48 }
  0x1b   : > { %1281 = dma.done.wait (%p1155_p4), [#allocation6], 128  }
  0x1c   : > { %1283 = vsyncadd (%p1155_p4), [#allocation6], 4294967168  ;;  %s1035_s17 = sshll.u32 %s1361_s10, 2 }
  0x1d   : > { %p335_p1 = scmp.lt.s32.totalorder %s1035_s17, 7  ;;  %349 = sbr.rel (%p1031_p2) target bundleno = 44 (0x2c), region = 56 }
  0x1f   : > { %s1568_s17 = smov (!%p335_p1, %s1035_s17), 7 }
  0x20   : > { %s1036_s18 = sshll.u32 %s1568_s17, 3 }
  0x21   : > { %s1388_s21 = scalar_lea.vmem %s1556_s0, %s1036_s18  ;;  %s1393_s24 = scalar_lea.vmem %s1563_s7, %s1036_s18 }
  0x22   : > { %v350_v0 = vld [vmem:[%s1560_s4] sm:$0xff]  ;;  %v351_v2 = vld [vmem:[%s1560_s4 + $0x8] sm:$0xff]  ;;  %vm383_vm0 = vcmask 261120   ;;  %v352_v4 = vld [vmem:[%s1560_s4 + $0x10] sm:$0xff]  ;;  %v1297_v6 = vmov 0.0  }
  0x23   : > { %v366_v1 = vld [vmem:[%s1558_s2] sm:$0xff]  ;;  %vm354_vm1 = vcmp.ge.f32.partialorder %v350_v0, 0.5  ;;  %vm355_vm2 = vcmp.ge.f32.partialorder %v351_v2, 0.5  ;;  %v367_v3 = vld [vmem:[%s1558_s2 + $0x8] sm:$0xff]  ;;  %v368_v5 = vld [vmem:[%s1558_s2 + $0x10] sm:$0xff]  ;;  %vm356_vm3 = vcmp.ge.f32.partialorder %v352_v4, 0.5 }
  0x24   : > { %v1040_v7 = vsel %vm354_vm1, 1.0, %v1297_v6  ;;  %v1041_v8 = vsel %vm355_vm2, 1.0, %v1297_v6  ;;  %v353_v9 = vld [vmem:[%s1560_s4 + $0x18] sm:$0xff]  ;;  %v382_v11 = vld [vmem:[%s1561_s5] sm:$0xff]  ;;  %v1042_v14 = vsel %vm356_vm3, 1.0, %v1297_v6  ;;  %v385_v15 = vld [vmem:[#allocation5] sm:$0xff] }
  0x25   : > { %v369_v10 = vld [vmem:[%s1558_s2 + $0x18] sm:$0xff]  ;;  %v370_v12 = vmul.f32 %v1040_v7, %v366_v1  ;;  %v371_v13 = vmul.f32 %v1041_v8, %v367_v3  ;;  %vm357_vm4 = vcmp.ge.f32.partialorder %v353_v9, 0.5  ;;  %384 = vst.msk [vmem:[#allocation2] sm:$0xff] %vm383_vm0, %v382_v11  ;;  %v372_v16 = vmul.f32 %v1042_v14, %v368_v5  ;;  %386 = vst.msk [vmem:[#allocation3] sm:$0xff] %vm383_vm0, %v385_v15 }
  0x26   : > { %v1043_v17 = vsel %vm357_vm4, 1.0, %v1297_v6 }
  0x27   : > { %v374_v18 = vmul.f32 2.0, %v370_v12  ;;  %v375_v19 = vmul.f32 2.0, %v371_v13  ;;  %v373_v20 = vmul.f32 %v1043_v17, %v369_v10  ;;  %v376_v21 = vmul.f32 2.0, %v372_v16 }
  0x29   : > { %378 = vst [vmem:[#allocation4 + $0x10] sm:$0xff] %v374_v18  ;;  %379 = vst [vmem:[#allocation4] sm:$0xff] %v375_v19  ;;  %v377_v22 = vmul.f32 2.0, %v373_v20 }
  0x2a   : > { %380 = vst [vmem:[#allocation4 + $0x18] sm:$0xff] %v376_v21 }
  0x2b   : > { %381 = vst [vmem:[#allocation4 + $0x8] sm:$0xff] %v377_v22 }
  0x2c PF: > { %v392_v23 = vld [vmem:[%s1557_s1 + $0x8] sm:$0xff]  ;;  %v391_v25 = vld [vmem:[%s1557_s1] sm:$0xff]  ;;  %v1298_v26 = vmov 0.0   ;;  %vm400_vm5 = vcmask 130048   ;;  %vm1299_vm6 = vmmov 0   ;;  %vm504_vm7 = vcmask 261120  }
  0x2d   : > { %1085 = vmatprep.subr.mxu0 %v392_v23  ;;  %1095 = vmatprep.subr.mxu1 %v1298_v26  ;;  %v387_v27 = vld [vmem:[%s1388_s21] sm:$0xff]  ;;  %v388_v29 = vld [vmem:[%s1388_s21 + $0x8] sm:$0xff]  ;;  %s1300_s13 = smov 64   ;;  %s1301_s14 = smov 32   ;;  %v389_v52 = vld [vmem:[%s1388_s21 + $0x10] sm:$0xff] }
  0x2e   : > { %1086 = vmatpush3.msra.mxu0 %v392_v23  ;;  %1089 = vmatprep.mubr.msk.f32.mxu0 %vm400_vm5, %v387_v27  ;;  %v502_v32 = vld [vmem:[#allocation2] sm:$0xff]  ;;  %v503_v41 = vld [vmem:[#allocation3] sm:$0xff]  ;;  %v390_v53 = vld [vmem:[%s1388_s21 + $0x18] sm:$0xff]  ;;  %s1302_s21 = smov 96   ;;  %s1303_s15 = smov [#allocation9]  }
  0x2f   : > { %1087 = vmatprep.subr.mxu0 %v391_v25  ;;  %1103 = vmatprep.mubr.msk.f32.mxu1 %vm1299_vm6, %v1298_v26  ;;  %v1477_v34 = vld [vmem:[%s1559_s3] ss:$0 sm:$0xff]  ;;  %s941_s16 = sshll.u32 %s1303_s15, 4  ;;  %p1157_p2 = scmp.eq.s32.totalorder %s1361_s10, 1  ;;  %s942_s16 = int_to_ptr.vmem [resolvable:$true] %s941_s16 }
  0x30   : > { %1088 = vmatpush3.msra.mxu0 %v391_v25  ;;  %v1442_v30 = vld [vmem:[#allocation4] sm:$0xff]  ;;  %v1447_v31 = vld [vmem:[#allocation4 + $0x10] sm:$0xff]  ;;  %s1228_s17 = scalar_lea.vmem %s942_s16, 128  ;;  %p1235_p6 = scmp.lt.s32.totalorder %s942_s16, %s942_s16 }
  0x31   : > { %v1437_v28 = vld [vmem:[#allocation4 + $0x18] sm:$0xff]  ;;  %1090 = vmatmul.mubr.msk.f32.vlgmr.msra.gmra.mxu0 %vm400_vm5, %v388_v29  ;;  %1106 = vmatprep.subr.mxu0 %v1298_v26  ;;  %p1229_p3 = scmp.ne.s32.totalorder %s942_s16, %s1228_s17  ;;  %p1236_p7 = scmp.lt.s32.totalorder %s1228_s17, %s1228_s17 }
  0x32   : > { %v1429_v24 = vld [vmem:[#allocation4 + $0x8] sm:$0xff]  ;;  %1092 = vmatprep.mubr.msk.f32.mxu0 %vm400_vm5, %v389_v52 }
  0x33   : > { %1096 = vmatpush3.msra.mxu1 %v1429_v24  ;;  %1107 = vmatpush3.msra.mxu0 %v1429_v24  ;;  %p1230_p4 = pnand %p1229_p3, %p1157_p2  ;;  %p1237_p8 = por %p1236_p7, %p1235_p6 }
  0x34   : > { %1097 = vmatprep.subr.mxu1 %v1298_v26  ;;  %1108 = vmatprep.subr.mxu0 %v1298_v26 }
  0x35   : > { %1098 = vmatpush3.msra.mxu1 %v1437_v28  ;;  %1109 = vmatpush3.msra.mxu0 %v1437_v28  ;;  %p1231_p5 = pneg %p1230_p4 }
  0x36   : > { %1099 = vmatprep.subr.mxu1 %v1298_v26  ;;  %1110 = vmatprep.subr.mxu0 %v1298_v26 }
  0x37   : > { %1100 = vmatpush3.msra.mxu1 %v1442_v30  ;;  %1111 = vmatpush3.msra.mxu0 %v1442_v30  ;;  %p1238_p9 = pnand %p1237_p8, %p1231_p5 }
  0x38   : > { %1101 = vmatprep.subr.mxu1 %v1298_v26  ;;  %1112 = vmatprep.subr.mxu0 %v1298_v26 }
  0x39   : > { %1102 = vmatpush3.msra.mxu1 %v1447_v31  ;;  %1113 = vmatpush3.msra.mxu0 %v1447_v31 }
  0x3a   : > { %1104 = vmatmul.mubr.msk.f32.vlgmr.msra.gmra.mxu1 %vm504_vm7, %v502_v32  ;;  %1117 = vmatprep.subr.mxu1 %v1298_v26 }
  0x3b   : > { %1118 = vmatpush3.msra.mxu1 %v1429_v24  ;;  %1125 = vmatprep.mubr.msk.f32.mxu1 %vm1299_vm6, %v1298_v26 }
  0x3c   : > { %1119 = vmatprep.subr.mxu1 %v1298_v26  ;;  %1128 = vmatprep.subr.mxu0 %v1298_v26 }
  0x3d   : > { %1120 = vmatpush3.msra.mxu1 %v1437_v28  ;;  %1093 = vmatmul.mubr.msk.f32.gmra.mxu0 %vm400_vm5, %v390_v53 }
  0x3e   : > { %1121 = vmatprep.subr.mxu1 %v1298_v26  ;;  %1114 = vmatprep.mubr.msk.f32.mxu0 %vm1299_vm6, %v1298_v26 }
  0x3f   : > { %1122 = vmatpush3.msra.mxu1 %v1442_v30 }
  0x40   : > { %1123 = vmatprep.subr.mxu1 %v1298_v26 }
  0x41   : > { %1124 = vmatpush3.msra.mxu1 %v1447_v31 }
  0xf1   : > { %v1091_v33 = vpop.f32.mrf.mxu0 }
  0xf2   : > { %v485_v60 = vadd.f32 %v1091_v33, %v1477_v34 }
  0xf3   : > { %v479_v35 = vpop.f32.mrf.mxu0 }
  0xf4   : > { %v480_v36 = vadd.f32 %v1477_v34, %v479_v35 }
  0xfa   : > { %v574_v37 = vpop.f32.mrf.mxu1 }
  0xfb   : > { %v575_v38 = vadd.f32 %v574_v37, %v480_v36 }
  0xfc   : > { %v1105_v39 = vpop.f32.mrf.mxu1 }
  0xfd   : > { %1178 = vtanh.f32 %v575_v38  ;;  %v578_v42 = vmul.f32 0.5, %v575_v38  ;;  %v1094_v58 = vpop.f32.mrf.mxu0 }
  0xfe   : > { %v495_v32 = vadd.f32 %v1094_v58, %v1477_v34 }
  0xff   : > { %1180 = vtanh.f32 %v578_v42  ;;  %v489_v59 = vpop.f32.mrf.mxu0 }
 0x100   : > { %v490_v14 = vadd.f32 %v1477_v34, %v489_v59 }
 0x10a   : > { %v1179_v40 = vpop.eup %1178 }
 0x10b   : > { %589 = vrot.lane.b32.xlu0 %v1179_v40, %s1300_s13 }
 0x10c   : > { %v1181_v43 = vpop.eup %1180 }
 0x10d   : > { %v580_v44 = vadd.f32 1.0, %v1181_v43 }
 0x10f   : > { %584 = vrot.lane.b32.xlu0 %v503_v41, %s1301_s14  ;;  %v581_v45 = vmul.f32 0.5, %v580_v44 }
 0x17d   : > { %v590_v46 = vpop.permute.xlu0 %589 }
 0x17e   : > { %v592_v47 = vmul.f32 %v590_v46, %v581_v45 }
 0x180   : > { %594 = vrot.lane.b32.xlu1 %v592_v47, %s1301_s14 }
 0x181   : > { %v585_v48 = vpop.permute.xlu0 %584 }
 0x182   : > { %v587_v49 = vmul.f32 %v585_v48, %v581_v45 }
 0x1f2   : > { %v595_v50 = vpop.permute.xlu1 %594 }
 0x1f3   : > { %v597_v51 = vadd.f32 %v595_v50, %v587_v49 }
 0x1f5   : > { %1182 = vtanh.f32 %v597_v51 }
 0x202   : > { %v1183_v54 = vpop.eup %1182 }
 0x203   : > { %600 = vrot.lane.b32.xlu1 %v1183_v54, %s1300_s13 }
 0x275   : > { %v601_v55 = vpop.permute.xlu1 %600 }
 0x276   : > { %v603_v56 = vmul.f32 %v601_v55, %v581_v45 }
 0x278   : > { %605 = vrot.lane.b32.xlu0 %v603_v56, %s1301_s14 }
 0x2ea   : > { %v606_v57 = vpop.permute.xlu0 %605 }
 0x2eb   : > { %608 = vst.msk [vmem:[%s1393_s24] sm:$0xff] %vm504_vm7, %v606_v57  ;;  %1115 = vmatmul.mubr.msk.f32.vlgmr.msra.gmra.mxu0 %vm504_vm7, %v606_v57 }
 0x2ec   : > { %1129 = vmatpush3.msra.mxu0 %v1429_v24  ;;  %1136 = vmatprep.mubr.msk.f32.mxu0 %vm1299_vm6, %v1298_v26 }
 0x2ed   : > { %1130 = vmatprep.subr.mxu0 %v1298_v26 }
 0x2ee   : > { %1131 = vmatpush3.msra.mxu0 %v1437_v28 }
 0x2ef   : > { %1132 = vmatprep.subr.mxu0 %v1298_v26 }
 0x2f0   : > { %1133 = vmatpush3.msra.mxu0 %v1442_v30 }
 0x2f1   : > { %1134 = vmatprep.subr.mxu0 %v1298_v26 }
 0x2f2   : > { %1135 = vmatpush3.msra.mxu0 %v1447_v31 }
 0x3ab   : > { %v677_v61 = vpop.f32.mrf.mxu0 }
 0x3ac   : > { %v678_v62 = vadd.f32 %v677_v61, %v485_v60 }
 0x3ad   : > { %v1116_v63 = vpop.f32.mrf.mxu0 }
 0x3ae   : > { %1184 = vtanh.f32 %v678_v62  ;;  %v681_v1 = vmul.f32 0.5, %v678_v62 }
 0x3b0   : > { %1186 = vtanh.f32 %v681_v1 }
 0x3bb   : > { %v1185_v0 = vpop.eup %1184 }
 0x3bc   : > { %688 = vrot.lane.b32.xlu1 %v1185_v0, %s1300_s13 }
 0x3bd   : > { %v1187_v2 = vpop.eup %1186 }
 0x3be   : > { %v683_v3 = vadd.f32 1.0, %v1187_v2 }
 0x3c0   : > { %v684_v4 = vmul.f32 0.5, %v683_v3 }
 0x3c2   : > { %v686_v7 = vmul.f32 %v684_v4, %v597_v51 }
 0x42e   : > { %v689_v5 = vpop.permute.xlu1 %688 }
 0x42f   : > { %v691_v6 = vmul.f32 %v689_v5, %v684_v4 }
 0x431   : > { %693 = vrot.lane.b32.xlu0 %v691_v6, %s1301_s14 }
 0x4a3   : > { %v694_v8 = vpop.permute.xlu0 %693 }
 0x4a4   : > { %v696_v9 = vadd.f32 %v694_v8, %v686_v7 }
 0x4a6   : > { %1188 = vtanh.f32 %v696_v9 }
 0x4b3   : > { %v1189_v10 = vpop.eup %1188 }
 0x4b4   : > { %699 = vrot.lane.b32.xlu1 %v1189_v10, %s1300_s13 }
 0x526   : > { %v700_v11 = vpop.permute.xlu1 %699 }
 0x527   : > { %v702_v12 = vmul.f32 %v700_v11, %v684_v4 }
 0x529   : > { %704 = vrot.lane.b32.xlu0 %v702_v12, %s1301_s14 }
 0x59b   : > { %v705_v13 = vpop.permute.xlu0 %704 }
 0x59c   : > { %707 = vst.msk [vmem:[%s1393_s24 + $0x8] sm:$0xff] %vm504_vm7, %v705_v13  ;;  %1126 = vmatmul.mubr.msk.f32.vlgmr.msra.gmra.mxu1 %vm504_vm7, %v705_v13 }
 0x65c   : > { %v776_v15 = vpop.f32.mrf.mxu1 }
 0x65d   : > { %v777_v16 = vadd.f32 %v776_v15, %v490_v14 }
 0x65e   : > { %v1127_v17 = vpop.f32.mrf.mxu1 }
 0x65f   : > { %1190 = vtanh.f32 %v777_v16  ;;  %v780_v19 = vmul.f32 0.5, %v777_v16 }
 0x661   : > { %1192 = vtanh.f32 %v780_v19 }
 0x66c   : > { %v1191_v18 = vpop.eup %1190 }
 0x66d   : > { %787 = vrot.lane.b32.xlu1 %v1191_v18, %s1300_s13 }
 0x66e   : > { %v1193_v20 = vpop.eup %1192 }
 0x66f   : > { %v782_v21 = vadd.f32 1.0, %v1193_v20 }
 0x671   : > { %v783_v22 = vmul.f32 0.5, %v782_v21 }
 0x673   : > { %v785_v25 = vmul.f32 %v783_v22, %v696_v9 }
 0x6df   : > { %v788_v23 = vpop.permute.xlu1 %787 }
 0x6e0   : > { %v790_v24 = vmul.f32 %v788_v23, %v783_v22 }
 0x6e2   : > { %792 = vrot.lane.b32.xlu0 %v790_v24, %s1301_s14 }
 0x754   : > { %v793_v26 = vpop.permute.xlu0 %792 }
 0x755   : > { %v795_v27 = vadd.f32 %v793_v26, %v785_v25 }
 0x757   : > { %1194 = vtanh.f32 %v795_v27 }
 0x764   : > { %v1195_v28 = vpop.eup %1194 }
 0x765   : > { %798 = vrot.lane.b32.xlu1 %v1195_v28, %s1300_s13 }
 0x7d7   : > { %v799_v29 = vpop.permute.xlu1 %798 }
 0x7d8   : > { %v801_v30 = vmul.f32 %v799_v29, %v783_v22 }
 0x7da   : > { %803 = vrot.lane.b32.xlu0 %v801_v30, %s1301_s14 }
 0x84c   : > { %v804_v31 = vpop.permute.xlu0 %803 }
 0x84d   : > { %806 = vst.msk [vmem:[%s1393_s24 + $0x10] sm:$0xff] %vm504_vm7, %v804_v31  ;;  %1137 = vmatmul.mubr.msk.f32.vlgmr.msra.gmra.mxu0 %vm504_vm7, %v804_v31 }
 0x90d   : > { %v875_v33 = vpop.f32.mrf.mxu0 }
 0x90e   : > { %v876_v35 = vadd.f32 %v875_v33, %v495_v32 }
 0x90f   : > { %v1138_v36 = vpop.f32.mrf.mxu0 }
 0x910   : > { %1196 = vtanh.f32 %v876_v35  ;;  %v879_v38 = vmul.f32 0.5, %v876_v35 }
 0x912   : > { %1198 = vtanh.f32 %v879_v38 }
 0x91d   : > { %v1197_v37 = vpop.eup %1196 }
 0x91e   : > { %886 = vrot.lane.b32.xlu1 %v1197_v37, %s1300_s13 }
 0x91f   : > { %v1199_v39 = vpop.eup %1198 }
 0x920   : > { %v881_v40 = vadd.f32 1.0, %v1199_v39 }
 0x922   : > { %v882_v41 = vmul.f32 0.5, %v881_v40 }
 0x924   : > { %v884_v44 = vmul.f32 %v882_v41, %v795_v27 }
 0x990   : > { %v887_v42 = vpop.permute.xlu1 %886 }
 0x991   : > { %v889_v43 = vmul.f32 %v887_v42, %v882_v41 }
 0x993   : > { %891 = vrot.lane.b32.xlu0 %v889_v43, %s1301_s14 }
 0xa05   : > { %v892_v45 = vpop.permute.xlu0 %891 }
 0xa06   : > { %v894_v34 = vadd.f32 %v892_v45, %v884_v44 }
 0xa08   : > { %1200 = vtanh.f32 %v894_v34 }
 0xa15   : > { %v1201_v46 = vpop.eup %1200 }
 0xa16   : > { %897 = vrot.lane.b32.xlu1 %v1201_v46, %s1300_s13 }
 0xa1a   : > { %908 = vrot.lane.b32.xlu1 %v894_v34, %s1302_s21 }
 0xa88   : > { %v898_v47 = vpop.permute.xlu1 %897 }
 0xa89   : > { %v900_v48 = vmul.f32 %v898_v47, %v882_v41 }
 0xa8b   : > { %902 = vrot.lane.b32.xlu0 %v900_v48, %s1301_s14 }
 0xa8c   : > { %v909_v49 = vpop.permute.xlu1 %908 }
 0xa8d   : > { %911 = vst.msk [vmem:[#allocation3] sm:$0xff] %vm504_vm7, %v909_v49  ;;  %913 = vst.msk [vmem:[#allocation9] sm:$0xff] %vm504_vm7, %v909_v49 }
 0xa8e   : > { %1241 = shalt.err (!%p1238_p9)
}
 0xa8f   : > { %1146 = dma.vmem_to_hbm [thread:$0]  (%p1157_p2), %s942_s16, 128, %s1565_s9, [#allocation10]  }
 0xa90   : > { %s1304_s20 = smov [#allocation8]  }
 0xa91   : > { %s930_s22 = sshll.u32 %s1304_s20, 4  ;;  %s931_s22 = int_to_ptr.vmem [resolvable:$true] %s930_s22 }
 0xa92   : > { %s1252_s23 = scalar_lea.vmem %s931_s22, 128  ;;  %p1259_p13 = scmp.lt.s32.totalorder %s931_s22, %s931_s22 }
 0xa93   : > { %p1253_p10 = scmp.ne.s32.totalorder %s931_s22, %s1252_s23  ;;  %p1260_p0 = scmp.lt.s32.totalorder %s1252_s23, %s1252_s23 }
 0xa95   : > { %p1254_p11 = pnand %p1253_p10, %p1157_p2  ;;  %p1261_p1 = por %p1260_p0, %p1259_p13 }
 0xa97   : > { %p1255_p12 = pneg %p1254_p11 }
 0xa99   : > { %p1262_p3 = pnand %p1261_p1, %p1255_p12 }
 0xafd   : > { %v903_v50 = vpop.permute.xlu0 %902 }
 0xafe   : > { %905 = vst.msk [vmem:[%s1393_s24 + $0x18] sm:$0xff] %vm504_vm7, %v903_v50  ;;  %906 = vst.msk [vmem:[#allocation2] sm:$0xff] %vm504_vm7, %v903_v50 }
 0xaff   : > { %912 = vst.msk [vmem:[#allocation8] sm:$0xff] %vm504_vm7, %v903_v50 }
 0xb00   : > { %1265 = shalt.err (!%p1262_p3)
}
 0xb01   : > { %1144 = dma.vmem_to_hbm [thread:$0]  (%p1157_p2), %s931_s22, 128, %s1564_s8, [#allocation7]  }
 0xb02   : > { %1285 = dma.done.wait (%p1157_p2), [#allocation7], 128  }
 0xb03   : > { %1287 = vsyncadd (%p1157_p2), [#allocation7], 4294967168 }
 0xb04   : > { %1289 = dma.done.wait (%p1157_p2), [#allocation10], 128  }
 0xb05   : > { %1291 = vsyncadd (%p1157_p2), [#allocation10], 4294967168 }
 0xb06 PF: > { %s23_s30 = sadd.s32 1, %s1294_s30  }
 0xb07   : > { %p20_p4 = scmp.ge.s32.totalorder %s23_s30, 4  }
 0xb09   :  { %22 = sbr.rel (!%p20_p4) target bundleno = 3 (0x3), region = 104 }
 0xb0e   :  { %966 = vsyncpa [#allocation6], 1 }
 0xb0f   :  { %968 = vsyncpa [#allocation6 + $0x1], 1 }
 0xb10   :  { %969 = vsyncpa [#allocation7], 1 }
 0xb11   :  { %971 = vsyncpa [#allocation7 + $0x1], 1 }
 0xb12   :  { %972 = vsyncpa [#allocation10], 1 }

</bundles_post_ra>
